<compile_context>
chip_gen: v7x
topology: tpu7x:2x2x1
jax: 0.10.0
libtpu: 0.0.40
codegen_flags: <defaults>
</compile_context>

<pallas_src>
import jax
import jax.numpy as jnp
from jax.experimental import pallas as pl
from jax.experimental.pallas import tpu as pltpu


def policy_kernel(x_ref, w1_ref, b1_ref, w2_ref, b2_ref, o_ref):
    # hidden = relu(x @ W1 + b1)      (dropout == identity in eval mode)
    x = x_ref[...]
    h = jnp.dot(x, w1_ref[...], preferred_element_type=jnp.float32) + b1_ref[...]
    h = jnp.maximum(h, 0.0)
    # logits = h @ W2 + b2
    logits = jnp.dot(h, w2_ref[...], preferred_element_type=jnp.float32) + b2_ref[...]
    # softmax along dim=1 (the action axis) -- exact normalization so that
    # sum(probs, axis=1) == 1 to float32 precision.
    m = jnp.max(logits, axis=1, keepdims=True)
    e = jnp.exp(logits - m)
    denom = jnp.sum(e, axis=1, keepdims=True)
    o_ref[...] = (e / denom).astype(o_ref.dtype)


def _round_up(n, m):
    return ((n + m - 1) // m) * m


def policy_forward(x, w1, b1, w2, b2, *, tb=512):
    """x: [B, obs_dim] float32 -> softmax action probs [B, n_actions]."""
    B, obs_dim = x.shape
    width = w1.shape[1]
    n_actions = w2.shape[1]

    # Batch tile: multiple of 8 (sublane granularity), capped at `tb`.
    TB = min(tb, _round_up(B, 8))
    Bp = _round_up(B, TB)
    if Bp != B:
        x = jnp.pad(x, ((0, Bp - B), (0, 0)))

    grid = (Bp // TB,)

    cost = pl.CostEstimate(
        flops=2 * Bp * (obs_dim * width + width * n_actions),
        transcendentals=Bp * n_actions,
        bytes_accessed=int(
            x.nbytes + w1.nbytes + b1.nbytes + w2.nbytes + b2.nbytes
            + Bp * n_actions * 4
        ),
    )

    out = pl.pallas_call(
        policy_kernel,
        out_shape=jax.ShapeDtypeStruct((Bp, n_actions), jnp.float32),
        grid=grid,
        in_specs=[
            # Activations: streamed per batch tile.
            pl.BlockSpec((TB, obs_dim), lambda i: (i, 0)),
            # Weights/biases: same block every step -> resident in VMEM.
            pl.BlockSpec((obs_dim, width), lambda i: (0, 0)),
            pl.BlockSpec((1, width), lambda i: (0, 0)),
            pl.BlockSpec((width, n_actions), lambda i: (0, 0)),
            pl.BlockSpec((1, n_actions), lambda i: (0, 0)),
        ],
        out_specs=pl.BlockSpec((TB, n_actions), lambda i: (i, 0)),
        compiler_params=pltpu.CompilerParams(
            dimension_semantics=("parallel",)),
        cost_estimate=cost,
    )(x, w1, b1, w2, b2)

    return out[:B]


def init_params(key, obs_dim, width, n_actions):
    """Deterministic PyTorch-style Linear init: U(-1/sqrt(fan_in), 1/sqrt(fan_in))."""
    k1, k2, k3, k4 = jax.random.split(key, 4)
    bound1 = 1.0 / jnp.sqrt(obs_dim)
    bound2 = 1.0 / jnp.sqrt(width)
    w1 = jax.random.uniform(k1, (obs_dim, width), jnp.float32, -bound1, bound1)
    b1 = jax.random.uniform(k2, (1, width), jnp.float32, -bound1, bound1)
    w2 = jax.random.uniform(k3, (width, n_actions), jnp.float32, -bound2, bound2)
    b2 = jax.random.uniform(k4, (1, n_actions), jnp.float32, -bound2, bound2)
    return w1, b1, w2, b2


def _reference(x, w1, b1, w2, b2):
    h = jnp.maximum(x @ w1 + b1, 0.0)
    return jax.nn.softmax(h @ w2 + b2, axis=1)


if __name__ == "__main__":
    # Small shapes consistent with the module (CartPole-like env):
    # batch=8, obs_dim=4, hidden width=32, n_actions=2.
    B, OBS, WIDTH, ACT = 8, 4, 32, 2

    key = jax.random.PRNGKey(0)
    kx, kp, kx2 = jax.random.split(key, 3)
    x = jax.random.normal(kx, (B, OBS), dtype=jnp.float32)
    w1, b1, w2, b2 = init_params(kp, OBS, WIDTH, ACT)

    probs = policy_forward(x, w1, b1, w2, b2)
    probs = jax.block_until_ready(probs)

    ref = _reference(x, w1, b1, w2, b2)
    assert probs.shape == (B, ACT)
    assert jnp.allclose(probs, ref, atol=1e-5), "mismatch vs reference (small batch)"
    assert jnp.allclose(jnp.sum(probs, axis=1), 1.0, atol=1e-5)

    # Also exercise the multi-tile grid + padding path (B not a multiple of TB).
    B2 = 1000
    x2 = jax.random.normal(kx2, (B2, OBS), dtype=jnp.float32)
    probs2 = jax.block_until_ready(policy_forward(x2, w1, b1, w2, b2))
    ref2 = _reference(x2, w1, b1, w2, b2)
    assert probs2.shape == (B2, ACT)
    assert jnp.allclose(probs2, ref2, atol=1e-5), "mismatch vs reference (batched grid)"
    assert jnp.allclose(jnp.sum(probs2, axis=1), 1.0, atol=1e-5)

    print("KERNEL_OK")
</pallas_src>

<mosaic_0001>
module attributes {stable_mosaic.version = 11 : i64} {
  func.func @policy_kernel(%arg0: i32, %arg1: memref<8x4xf32, #tpu.memory_space<vmem>>, %arg2: memref<4x32xf32, #tpu.memory_space<vmem>>, %arg3: memref<1x32xf32, #tpu.memory_space<vmem>>, %arg4: memref<32x2xf32, #tpu.memory_space<vmem>>, %arg5: memref<1x2xf32, #tpu.memory_space<vmem>>, %arg6: memref<8x2xf32, #tpu.memory_space<vmem>>) attributes {dimension_semantics = [#tpu.dimension_semantics<parallel>], iteration_bounds = array<i64: 1>, scalar_prefetch = 0 : i64, scratch_operands = 0 : i64, tpu.core_type = #tpu.core_type<tc>, window_params = [{transform_indices = @transform_0, window_bounds = array<i64: 8, 4>}, {pipeline_mode = #tpu.pipeline_mode<synchronous>, transform_indices = @transform_1, window_bounds = array<i64: 4, 32>}, {pipeline_mode = #tpu.pipeline_mode<synchronous>, transform_indices = @transform_2, window_bounds = array<i64: 1, 32>}, {pipeline_mode = #tpu.pipeline_mode<synchronous>, transform_indices = @transform_3, window_bounds = array<i64: 32, 2>}, {pipeline_mode = #tpu.pipeline_mode<synchronous>, transform_indices = @transform_4, window_bounds = array<i64: 1, 2>}, {transform_indices = @transform_5, window_bounds = array<i64: 8, 2>}]} {
    %c0 = arith.constant 0 : index
    %c0_0 = arith.constant 0 : index
    %0 = vector.load %arg1[%c0, %c0_0] : memref<8x4xf32, #tpu.memory_space<vmem>>, vector<8x4xf32>
    %c0_1 = arith.constant 0 : index
    %c0_2 = arith.constant 0 : index
    %1 = vector.load %arg2[%c0_1, %c0_2] : memref<4x32xf32, #tpu.memory_space<vmem>>, vector<4x32xf32>
    %cst = arith.constant dense<0.000000e+00> : vector<8x32xf32>
    %2 = tpu.matmul %0, %1, %cst {dimension_numbers = #tpu.dot_dimension_numbers<[1], [0], [0], [1], [0, 0, 1, 1], [], []>} : vector<8x4xf32>, vector<4x32xf32>, vector<8x32xf32> -> vector<8x32xf32>
    %c0_3 = arith.constant 0 : index
    %c0_4 = arith.constant 0 : index
    %3 = vector.load %arg3[%c0_3, %c0_4] : memref<1x32xf32, #tpu.memory_space<vmem>>, vector<1x32xf32>
    %4 = vector.broadcast %3 : vector<1x32xf32> to vector<8x32xf32>
    %5 = arith.addf %2, %4 : vector<8x32xf32>
    %cst_5 = arith.constant 0.000000e+00 : f32
    %6 = vector.broadcast %cst_5 : f32 to vector<8x32xf32>
    %7 = arith.maximumf %5, %6 : vector<8x32xf32>
    %c0_6 = arith.constant 0 : index
    %c0_7 = arith.constant 0 : index
    %8 = vector.load %arg4[%c0_6, %c0_7] : memref<32x2xf32, #tpu.memory_space<vmem>>, vector<32x2xf32>
    %cst_8 = arith.constant dense<0.000000e+00> : vector<8x2xf32>
    %9 = tpu.matmul %7, %8, %cst_8 {dimension_numbers = #tpu.dot_dimension_numbers<[1], [0], [0], [1], [0, 0, 1, 1], [], []>} : vector<8x32xf32>, vector<32x2xf32>, vector<8x2xf32> -> vector<8x2xf32>
    %c0_9 = arith.constant 0 : index
    %c0_10 = arith.constant 0 : index
    %10 = vector.load %arg5[%c0_9, %c0_10] : memref<1x2xf32, #tpu.memory_space<vmem>>, vector<1x2xf32>
    %11 = vector.broadcast %10 : vector<1x2xf32> to vector<8x2xf32>
    %12 = arith.addf %9, %11 : vector<8x2xf32>
    %cst_11 = arith.constant dense<0xFF800000> : vector<8xf32>
    %13 = vector.multi_reduction <maximumf>, %12, %cst_11 [1] : vector<8x2xf32> to vector<8xf32>
    %14 = vector.shape_cast %13 : vector<8xf32> to vector<8x1xf32>
    %15 = vector.broadcast %14 : vector<8x1xf32> to vector<8x2xf32>
    %16 = arith.subf %12, %15 : vector<8x2xf32>
    %17 = math.exp %16 : vector<8x2xf32>
    %cst_12 = arith.constant dense<0.000000e+00> : vector<8xf32>
    %18 = vector.multi_reduction <add>, %17, %cst_12 [1] : vector<8x2xf32> to vector<8xf32>
    %19 = vector.shape_cast %18 : vector<8xf32> to vector<8x1xf32>
    %20 = vector.broadcast %19 : vector<8x1xf32> to vector<8x2xf32>
    %21 = arith.divf %17, %20 : vector<8x2xf32>
    %c0_13 = arith.constant 0 : index
    %c0_14 = arith.constant 0 : index
    %22 = vector.load %arg6[%c0_13, %c0_14] : memref<8x2xf32, #tpu.memory_space<vmem>>, vector<8x2xf32>
    tpu.vector_store %arg6[%c0_13, %c0_14], %21 {strides = array<i32>} : memref<8x2xf32, #tpu.memory_space<vmem>>, vector<8x2xf32>,
    return
  }
  func.func @transform_0(%arg0: i32) -> (i32, i32) {
    %c0_i32 = arith.constant 0 : i32
    %c0_i32_0 = arith.constant 0 : i32
    return %arg0, %c0_i32 : i32, i32
  }
  func.func @transform_1(%arg0: i32) -> (i32, i32) {
    %c0_i32 = arith.constant 0 : i32
    %c0_i32_0 = arith.constant 0 : i32
    %c0_i32_1 = arith.constant 0 : i32
    return %c0_i32, %c0_i32_0 : i32, i32
  }
  func.func @transform_2(%arg0: i32) -> (i32, i32) {
    %c0_i32 = arith.constant 0 : i32
    %c0_i32_0 = arith.constant 0 : i32
    %c0_i32_1 = arith.constant 0 : i32
    return %c0_i32, %c0_i32_0 : i32, i32
  }
  func.func @transform_3(%arg0: i32) -> (i32, i32) {
    %c0_i32 = arith.constant 0 : i32
    %c0_i32_0 = arith.constant 0 : i32
    %c0_i32_1 = arith.constant 0 : i32
    return %c0_i32, %c0_i32_0 : i32, i32
  }
  func.func @transform_4(%arg0: i32) -> (i32, i32) {
    %c0_i32 = arith.constant 0 : i32
    %c0_i32_0 = arith.constant 0 : i32
    %c0_i32_1 = arith.constant 0 : i32
    return %c0_i32, %c0_i32_0 : i32, i32
  }
  func.func @transform_5(%arg0: i32) -> (i32, i32) {
    %c0_i32 = arith.constant 0 : i32
    %c0_i32_0 = arith.constant 0 : i32
    return %arg0, %c0_i32 : i32, i32
  }
}

</mosaic_0001>

<bundles_post_ra>
// kernel: tpu_custom_call.1
= control target key start
LH: loop header
LB: loop body
LE: loop exit
PB: predicated region body
PF: predicated region fallthrough
CT: control target
= control target key end

     0   :  { %vm33_vm0 = vcmask 1043456   ;;  %vm29_vm1 = vcmask 31744   ;;  %v251_v0 = vmov 0.0   ;;  %vm252_vm2 = vmmov 0   ;;  %s314_s1 = inlined_call_operand.vmem [shape: f32[4,32], index: 1, kind: input, shape index: {}]   ;;  %s315_s0 = inlined_call_operand.vmem [shape: f32[8,4], index: 0, kind: input, shape index: {}]   ;;  %s316_s3 = inlined_call_operand.vmem [shape: f32[32,2], index: 3, kind: input, shape index: {}]   ;;  %s317_s2 = inlined_call_operand.vmem [shape: f32[1,32], index: 2, kind: input, shape index: {}]   ;;  %s318_s4 = inlined_call_operand.vmem [shape: f32[1,2], index: 4, kind: input, shape index: {}]   ;;  %s319_s5 = inlined_call_operand.vmem [shape: f32[8,2], index: 5, kind: output, shape index: {}]  }
   0x1   :  { %222 = vmatprep.subr.mxu0 %v251_v0  ;;  %v21_v1 = vld [vmem:[%s314_s1] sm:$0xf]  ;;  %224 = vmatprep.mubr.msk.f32.mxu0 %vm252_vm2, %v251_v0  ;;  %v253_v4 = vmov 0.0|0.0   ;;  %v109_v5 = vld [vmem:[%s316_s3 + $0x8] sm:$0xff]  ;;  %v110_v7 = vld [vmem:[%s316_s3 + $0x10] sm:$0xff]  ;;  %vm119_vm3 = vcmask 261120  }
   0x2   :  { %v20_v2 = vld [vmem:[%s315_s0] sm:$0xff]  ;;  %223 = vmatpush3.msk.msra.mxu0 %vm33_vm0, %v21_v1  ;;  %238 = vmatprep.subr.bf16.mxu1 %v253_v4  ;;  %v111_v8 = vld [vmem:[%s316_s3 + $0x18] sm:$0xff]  ;;  %vm193_vm4 = vcmask 15360  }
   0x3   :  { %v108_v3 = vld [vmem:[%s316_s3] sm:$0xff]  ;;  %225 = vmatmul.mubr.msk.f32.vlgmr.msra.gmra.mrb[0].mxu0 %vm29_vm1, %v20_v2  ;;  %235 = vmatprep.mubr.msk.f32.mxu1 %vm252_vm2, %v251_v0  ;;  %v242_v9 = vpack.c.bf16 %v111_v8, %v110_v7 }
   0x4   :  { %v239_v6 = vpack.c.bf16 %v109_v5, %v108_v3  ;;  %v210_v10 = vld [vmem:[%s317_s2] ss:$0 sm:$0xff] }
   0x5   :  { %v213_v15 = vld [vmem:[%s318_s4] ss:$0 sm:$0xff] }
   0x6   :  { %240 = vmatpush3.bf16.msra.mxu1 %v239_v6 }
   0x7   :  { %241 = vmatprep.subr.bf16.mxu1 %v253_v4 }
   0xa   :  { %243 = vmatpush3.bf16.msra.mxu1 %v242_v9 }
  0xd6   :  { %v103_v11 = vpop.f32.mrb[0].mxu0 }
  0xd7   :  { %v104_v12 = vadd.f32 %v210_v10, %v103_v11  ;;  %v226_v13 = vpop.f32.mrb[1].mxu0 }
  0xd9   :  { %v107_v14 = vmax.f32 %v104_v12, 0.0 }
  0xdb   :  { %236 = vmatmul.mubr.msk.f32.vlgmr.msra.gmra.mrb[0].mxu1 %vm119_vm3, %v107_v14 }
 0x1ae   :  { %v189_v16 = vpop.f32.mrb[0].mxu1 }
 0x1af   :  { %v190_v17 = vadd.f32 %v213_v15, %v189_v16  ;;  %v237_v18 = vpop.f32.mrb[1].mxu1 }
 0x1b1   :  { %v194_v19 = vsel %vm193_vm4, %v190_v17, -inf }
 0x1b2   :  { %195 = vmax.xlane.f32.xlu0 %v194_v19 }
 0x23f   :  { %v196_v20 = vpop.xlane.xlu0 %195 }
 0x240   :  { %v197_v21 = vsub.f32 %v190_v17, %v196_v20 }
 0x242   :  { %v198_v22 = vmul.f32 1.442695, %v197_v21 }
 0x244   :  { %247 = vpow2.f32 %v198_v22 }
 0x24e   :  { %v248_v23 = vpop.eup %247 }
 0x24f   :  { %v200_v24 = vsel %vm193_vm4, %v248_v23, 0.0 }
 0x250   :  { %201 = vadd.xlane.f32.xlu0 %v200_v24 }
 0x2dd   :  { %v202_v25 = vpop.xlane.xlu0 %201 }
 0x2de   :  { %249 = vrcp.f32 %v202_v25 }
 0x2e8   :  { %v250_v26 = vpop.eup %249 }
 0x2e9   :  { %v204_v27 = vmul.f32 %v250_v26, %v248_v23 }
 0x2eb   :  { %205 = vst.msk [vmem:[%s319_s5] sm:$0xff] %vm193_vm4, %v204_v27 }

</bundles_post_ra>
